<compile_context>
chip_gen: v6e
topology: v6e:2x2x1
jax: 0.10.0
libtpu: 0.0.40
codegen_flags: <defaults>
</compile_context>

<pallas_src>
import functools

import jax
import jax.numpy as jnp
from jax import lax
from jax.experimental import pallas as pl
from jax.experimental.pallas import tpu as pltpu


def _se_kernel(x_ref, bcast_ref, p_ref, o_ref, *, C, Cr, inv_hw):
    # x_ref     : (TN, C*HW)  native dtype     (one batch tile)
    # bcast_ref : (C,  C*HW)  x dtype          one-hot channel-membership matrix
    # p_ref     : (C+Cr+2, max(C,Cr)) f32      packed [w1^T ; b1 ; w2^T ; b2]
    x = x_ref[...]                                   # keep native dtype
    bcast = bcast_ref[...]

    # --- squeeze: per-(sample, channel) mean over H*W, as x @ B^T on the MXU
    pooled = lax.dot_general(
        x, bcast, (((1,), (1,)), ((), ())),
        preferred_element_type=jnp.float32) * inv_hw          # (TN, C) f32

    # --- excitation MLP (tiny; batched to M = TN)
    w1t = p_ref[0:C, 0:Cr]                                    # (C, Cr)
    b1 = p_ref[C:C + 1, 0:Cr]                                 # (1, Cr)
    w2t = p_ref[C + 1:C + 1 + Cr, 0:C]                        # (Cr, C)
    b2 = p_ref[C + 1 + Cr:C + 2 + Cr, 0:C]                    # (1, C)

    h = jnp.maximum(
        jnp.dot(pooled, w1t, preferred_element_type=jnp.float32) + b1, 0.0)
    s = jax.nn.sigmoid(
        jnp.dot(h, w2t, preferred_element_type=jnp.float32) + b2)  # (TN, C)

    # --- broadcast each channel's scale over its HW lanes and rescale x
    scale = jnp.dot(s.astype(x.dtype), bcast,
                    preferred_element_type=jnp.float32)       # (TN, C*HW)
    o_ref[...] = (x * scale.astype(x.dtype)).astype(o_ref.dtype)


def _choose_tile_n(n, chw, itemsize, target_bytes):
    """Batch-tile rows: ~target_bytes per x block, sublane-aligned (x8) or full N."""
    tn = max(1, target_bytes // (chw * itemsize))
    if tn >= n:
        return n                       # whole batch: block == full array dims
    tn = max(8, (tn // 8) * 8)         # keep the sublane dim (8,128)-dense
    return min(tn, n)


def squeeze_excitation(x_nchw, w1, b1, w2, b2, *, target_block_bytes=2 << 20):
    """x_nchw: (N,C,H,W); w1: (Cr,C,1,1); b1: (Cr,); w2: (C,Cr,1,1); b2: (C,)."""
    N, C, H, W = x_nchw.shape
    Cr = w1.shape[0]
    HW = H * W
    CHW = C * HW
    dt = x_nchw.dtype

    # big array: lane-dense 2-D slab, one row per sample
    x2 = x_nchw.reshape(N, CHW)

    # one-hot channel-membership matrix, reused for pooling (as B^T) and broadcast
    ch_of_col = jnp.arange(CHW, dtype=jnp.int32) // HW
    bcast = (ch_of_col[None, :]
             == jnp.arange(C, dtype=jnp.int32)[:, None]).astype(dt)   # (C, CHW)

    # pack the tiny FC params into a single small VMEM input
    w1t = w1.reshape(Cr, C).T.astype(jnp.float32)   # (C, Cr)
    w2t = w2.reshape(C, Cr).T.astype(jnp.float32)   # (Cr, C)
    rows = C + Cr + 2
    cols = max(C, Cr)
    params = jnp.zeros((rows, cols), jnp.float32)
    params = params.at[0:C, 0:Cr].set(w1t)
    params = params.at[C, 0:Cr].set(b1.astype(jnp.float32))
    params = params.at[C + 1:C + 1 + Cr, 0:C].set(w2t)
    params = params.at[C + 1 + Cr, 0:C].set(b2.astype(jnp.float32))

    tn = _choose_tile_n(N, CHW, x2.dtype.itemsize, target_block_bytes)
    grid = (pl.cdiv(N, tn),)

    kernel = functools.partial(_se_kernel, C=C, Cr=Cr, inv_hw=1.0 / HW)

    out2 = pl.pallas_call(
        kernel,
        out_shape=jax.ShapeDtypeStruct((N, CHW), dt),
        grid_spec=pltpu.PrefetchScalarGridSpec(
            num_scalar_prefetch=0,
            grid=grid,
            in_specs=[
                pl.BlockSpec((tn, CHW), lambda i: (i, 0)),     # x tile
                pl.BlockSpec((C, CHW), lambda i: (0, 0)),      # one-hot B
                pl.BlockSpec((rows, cols), lambda i: (0, 0)),  # packed FC params
            ],
            out_specs=pl.BlockSpec((tn, CHW), lambda i: (i, 0)),
        ),
        compiler_params=pltpu.CompilerParams(
            dimension_semantics=("parallel",),
            vmem_limit_bytes=32 * 1024 * 1024),
    )(x2, bcast, params)

    return out2.reshape(N, C, H, W)


def _reference(x, w1, b1, w2, b2):
    # pure-JAX reference of the PyTorch forward
    pooled = jnp.mean(x, axis=(2, 3), keepdims=True)                     # (N,C,1,1)
    h = jnp.einsum('ncij,ocij->noij', pooled, w1) + b1[None, :, None, None]
    h = jnp.maximum(h, 0.0)
    s = jnp.einsum('ncij,ocij->noij', h, w2) + b2[None, :, None, None]
    s = jax.nn.sigmoid(s)
    return x * s


if __name__ == "__main__":
    # Module config: channel=4, reduction=4  ->  Cr = 1
    N, C, H, W = 2, 4, 16, 16
    reduction = 4
    Cr = C // reduction

    key = jax.random.PRNGKey(0)
    kx, k1, k2, k3, k4 = jax.random.split(key, 5)

    x = jax.random.normal(kx, (N, C, H, W), dtype=jnp.float32)
    w1 = jax.random.normal(k1, (Cr, C, 1, 1), dtype=jnp.float32) * 0.5
    b1 = jax.random.normal(k2, (Cr,), dtype=jnp.float32) * 0.1
    w2 = jax.random.normal(k3, (C, Cr, 1, 1), dtype=jnp.float32) * 0.5
    b2 = jax.random.normal(k4, (C,), dtype=jnp.float32) * 0.1

    out = squeeze_excitation(x, w1, b1, w2, b2)
    out = jax.block_until_ready(out)

    ref = _reference(x, w1, b1, w2, b2)
    assert out.shape == (N, C, H, W)
    assert jnp.allclose(out, ref, atol=1e-5, rtol=1e-5), "mismatch vs reference"

    print("KERNEL_OK")
</pallas_src>

<mosaic_0001>
module attributes {stable_mosaic.version = 11 : i64} {
  func.func @_se_kernel(%arg0: i32, %arg1: memref<2x1024xf32, #tpu.memory_space<vmem>>, %arg2: memref<4x1024xf32, #tpu.memory_space<vmem>>, %arg3: memref<7x4xf32, #tpu.memory_space<vmem>>, %arg4: memref<2x1024xf32, #tpu.memory_space<vmem>>) attributes {dimension_semantics = [#tpu.dimension_semantics<parallel>], iteration_bounds = array<i64: 1>, scalar_prefetch = 0 : i64, scratch_operands = 0 : i64, tpu.core_type = #tpu.core_type<tc>, window_params = [{transform_indices = @transform_0, window_bounds = array<i64: 2, 1024>}, {pipeline_mode = #tpu.pipeline_mode<synchronous>, transform_indices = @transform_1, window_bounds = array<i64: 4, 1024>}, {pipeline_mode = #tpu.pipeline_mode<synchronous>, transform_indices = @transform_2, window_bounds = array<i64: 7, 4>}, {transform_indices = @transform_3, window_bounds = array<i64: 2, 1024>}]} {
    %c0 = arith.constant 0 : index
    %c0_0 = arith.constant 0 : index
    %0 = vector.load %arg1[%c0, %c0_0] : memref<2x1024xf32, #tpu.memory_space<vmem>>, vector<2x1024xf32>
    %c0_1 = arith.constant 0 : index
    %c0_2 = arith.constant 0 : index
    %1 = vector.load %arg2[%c0_1, %c0_2] : memref<4x1024xf32, #tpu.memory_space<vmem>>, vector<4x1024xf32>
    %cst = arith.constant dense<0.000000e+00> : vector<2x4xf32>
    %2 = tpu.matmul %0, %1, %cst {dimension_numbers = #tpu.dot_dimension_numbers<[1], [1], [0], [0], [0, 0, 1, 0], [], []>} : vector<2x1024xf32>, vector<4x1024xf32>, vector<2x4xf32> -> vector<2x4xf32>
    %cst_3 = arith.constant 3.906250e-03 : f32
    %3 = vector.broadcast %cst_3 : f32 to vector<2x4xf32>
    %4 = arith.mulf %2, %3 : vector<2x4xf32>
    %c0_4 = arith.constant 0 : index
    %c0_5 = arith.constant 0 : index
    %5 = vector.load %arg3[%c0_4, %c0_5] : memref<7x4xf32, #tpu.memory_space<vmem>>, vector<4x1xf32>
    %c4 = arith.constant 4 : index
    %c0_6 = arith.constant 0 : index
    %6 = vector.load %arg3[%c4, %c0_6] : memref<7x4xf32, #tpu.memory_space<vmem>>, vector<1x1xf32>
    %c5 = arith.constant 5 : index
    %c0_7 = arith.constant 0 : index
    %7 = vector.load %arg3[%c5, %c0_7] : memref<7x4xf32, #tpu.memory_space<vmem>>, vector<1x4xf32>
    %c6 = arith.constant 6 : index
    %c0_8 = arith.constant 0 : index
    %8 = vector.load %arg3[%c6, %c0_8] : memref<7x4xf32, #tpu.memory_space<vmem>>, vector<1x4xf32>
    %cst_9 = arith.constant dense<0.000000e+00> : vector<2x1xf32>
    %9 = tpu.matmul %4, %5, %cst_9 {dimension_numbers = #tpu.dot_dimension_numbers<[1], [0], [0], [1], [0, 0, 1, 1], [], []>} : vector<2x4xf32>, vector<4x1xf32>, vector<2x1xf32> -> vector<2x1xf32>
    %10 = vector.broadcast %6 : vector<1x1xf32> to vector<2x1xf32>
    %11 = arith.addf %9, %10 : vector<2x1xf32>
    %cst_10 = arith.constant 0.000000e+00 : f32
    %12 = vector.broadcast %cst_10 : f32 to vector<2x1xf32>
    %13 = arith.maximumf %11, %12 : vector<2x1xf32>
    %cst_11 = arith.constant dense<0.000000e+00> : vector<2x4xf32>
    %14 = tpu.matmul %13, %7, %cst_11 {dimension_numbers = #tpu.dot_dimension_numbers<[1], [0], [0], [1], [0, 0, 1, 1], [], []>} : vector<2x1xf32>, vector<1x4xf32>, vector<2x4xf32> -> vector<2x4xf32>
    %15 = vector.broadcast %8 : vector<1x4xf32> to vector<2x4xf32>
    %16 = arith.addf %14, %15 : vector<2x4xf32>
    %17 = arith.negf %16 : vector<2x4xf32>
    %18 = math.exp %17 : vector<2x4xf32>
    %cst_12 = arith.constant 1.000000e+00 : f32
    %19 = vector.broadcast %cst_12 : f32 to vector<2x4xf32>
    %20 = arith.addf %19, %18 : vector<2x4xf32>
    %21 = arith.divf %19, %20 : vector<2x4xf32>
    %cst_13 = arith.constant dense<0.000000e+00> : vector<2x1024xf32>
    %22 = tpu.matmul %21, %1, %cst_13 {dimension_numbers = #tpu.dot_dimension_numbers<[1], [0], [0], [1], [0, 0, 1, 1], [], []>} : vector<2x4xf32>, vector<4x1024xf32>, vector<2x1024xf32> -> vector<2x1024xf32>
    %23 = arith.mulf %0, %22 : vector<2x1024xf32>
    %c0_14 = arith.constant 0 : index
    %c0_15 = arith.constant 0 : index
    %24 = vector.load %arg4[%c0_14, %c0_15] : memref<2x1024xf32, #tpu.memory_space<vmem>>, vector<2x1024xf32>
    tpu.vector_store %arg4[%c0_14, %c0_15], %23 {strides = array<i32>} : memref<2x1024xf32, #tpu.memory_space<vmem>>, vector<2x1024xf32>,
    return
  }
  func.func @transform_0(%arg0: i32) -> (i32, i32) {
    %c0_i32 = arith.constant 0 : i32
    %c0_i32_0 = arith.constant 0 : i32
    return %arg0, %c0_i32 : i32, i32
  }
  func.func @transform_1(%arg0: i32) -> (i32, i32) {
    %c0_i32 = arith.constant 0 : i32
    %c0_i32_0 = arith.constant 0 : i32
    %c0_i32_1 = arith.constant 0 : i32
    return %c0_i32, %c0_i32_0 : i32, i32
  }
  func.func @transform_2(%arg0: i32) -> (i32, i32) {
    %c0_i32 = arith.constant 0 : i32
    %c0_i32_0 = arith.constant 0 : i32
    %c0_i32_1 = arith.constant 0 : i32
    return %c0_i32, %c0_i32_0 : i32, i32
  }
  func.func @transform_3(%arg0: i32) -> (i32, i32) {
    %c0_i32 = arith.constant 0 : i32
    %c0_i32_0 = arith.constant 0 : i32
    return %arg0, %c0_i32 : i32, i32
  }
}

</mosaic_0001>

<bundles_post_ra>
// kernel: tpu_custom_call.1
= control target key start
LH: loop header
LB: loop body
LE: loop exit
PB: predicated region body
PF: predicated region fallthrough
CT: control target
= control target key end

     0   :  { %8 = vsyncpa [#allocation3], 0  ;;  %s1144_s0 = inlined_call_operand.hbm [shape: f32[2,1024], index: 0, kind: input, shape index: {}]   ;;  %s1145_s1 = inlined_call_operand.hbm [shape: f32[4,1024], index: 1, kind: input, shape index: {}]   ;;  %s1146_s2 = inlined_call_operand.vmem [shape: f32[7,4], index: 2, kind: input, shape index: {}]   ;;  %s1147_s3 = inlined_call_operand.hbm [shape: f32[2,1024], index: 3, kind: output, shape index: {}]  }
   0x1   :  { %9 = vsyncpa [#allocation6], 0 }
   0x2   :  { %10 = vsyncpa [#allocation4], 0  ;;  %s1039_s12 = smov [#allocation2]   ;;  %s1040_s14 = smov [#allocation5]  }
   0x3   :  { %s17_s13 = sshll.u32 %s1039_s12, 4  ;;  %s27_s15 = sshll.u32 %s1040_s14, 4  ;;  %s18_s13 = int_to_ptr.vmem [resolvable:$true] %s17_s13  ;;  %s28_s15 = int_to_ptr.vmem [resolvable:$true] %s27_s15 }
   0x4   :  { %s981_s16 = scalar_lea.vmem %s18_s13, 256  ;;  %p986_p1 = scmp.lt.s32.totalorder %s18_s13, %s18_s13 }
   0x5   :  { %p982_p0 = scmp.ne.s32.totalorder %s18_s13, %s981_s16  ;;  %p987_p2 = scmp.lt.s32.totalorder %s981_s16, %s981_s16 }
   0x7   :  { %p988_p3 = por %p987_p2, %p986_p1 }
   0x9   :  { %p989_p4 = pnand %p988_p3, %p982_p0 }
   0xb   :  { %992 = shalt.err (!%p989_p4)
}
   0xc   :  { %20 = dma.hbm_to_vmem [thread:$0]  %s1144_s0, 256, %s18_s13, [#allocation3]  }
   0xd   :  { %s1001_s19 = scalar_lea.vmem %s28_s15, 512  ;;  %p1006_p6 = scmp.lt.s32.totalorder %s28_s15, %s28_s15 }
   0xe   :  { %p1002_p5 = scmp.ne.s32.totalorder %s28_s15, %s1001_s19  ;;  %p1007_p7 = scmp.lt.s32.totalorder %s1001_s19, %s1001_s19 }
  0x10   :  { %p1008_p8 = por %p1007_p7, %p1006_p6 }
  0x12   :  { %p1009_p9 = pnand %p1008_p8, %p1002_p5 }
  0x14   :  { %1012 = shalt.err (!%p1009_p9)
}
  0x15   :  { %30 = dma.hbm_to_vmem [thread:$0]  %s1145_s1, 512, %s28_s15, [#allocation6]  }
  0x16   :  { %1033 = dma.done.wait [#allocation3], 256  }
  0x17   :  { %1034 = vsyncadd [#allocation3], 4294967040 }
  0x18   :  { %1035 = dma.done.wait [#allocation6], 512  }
  0x19   :  { %1036 = vsyncadd [#allocation6], 4294966784  ;;  %v51_v0 = vlaneseq  ;;  %v1041_v1 = vmov 1983009808   ;;  %v41_v6 = vld [vmem:[#allocation5] sm:$0xff]  ;;  %v1073_v7 = vld [vmem:[#allocation5 + $0x8] sm:$0xff] }
  0x1a   :  { %v49_v2 = vunpack.c.l.s4 %v1041_v1  ;;  %v1075_v8 = vld [vmem:[#allocation2] sm:$0xff]  ;;  %v93_v9 = vcombine.high %v41_v6, %v41_v6  ;;  %v94_v10 = vcombine.high %v1073_v7, %v1073_v7  ;;  %v1085_v14 = vld [vmem:[#allocation5 + $0x18] sm:$0xff]  ;;  %v1042_v26 = vmov 0.0  }
  0x1b   :  { %v52_v3 = vshrl.u32 %v51_v0, 7  ;;  %v47_v12 = vcombine.high %v1075_v8, %v1075_v8  ;;  %v1083_v13 = vld [vmem:[#allocation5 + $0x10] sm:$0xff]  ;;  %v1087_v15 = vld [vmem:[#allocation2 + $0x8] sm:$0xff]  ;;  %v1093_v17 = vcombine.high %v1085_v14, %v1085_v14  ;;  %vm394_vm0 = vcmask 1043456  }
  0x1c   :  { %v50_v4 = vunpack.c.0.s8 %v49_v2  ;;  %v95_v16 = vcombine.high %v1083_v13, %v1083_v13  ;;  %v64_v19 = vcombine.high %v1087_v15, %v1087_v15  ;;  %131 = vmatprep.subr.mxu0 %v93_v9  ;;  %201 = vmatprep.subr.mxu1 %v94_v10  ;;  %v382_v27 = vld [vmem:[%s1146_s2] sm:$0xf]  ;;  %vm1043_vm1 = vmmov 0   ;;  %v384_v40 = vld [vmem:[%s1146_s2 + $0x5] sm:$0x1] }
  0x1d   :  { %132 = vmatpush1.xpose.msra.mxu0 %v41_v6  ;;  %202 = vmatpush1.xpose.msra.mxu1 %v1073_v7  ;;  %vm390_vm2 = vcmask 31744   ;;  %vm477_vm3 = vcmask 1040384   ;;  %v924_v41 = vld [vmem:[%s1146_s2 + $0x4] ss:$0 sm:$0xff]  ;;  %vm473_vm4 = vcmask 7168  }
  0x1e   :  { %v1071_v5 = vsub.s32 %v50_v4, %v52_v3  ;;  %271 = vmatprep.subr.mxu0 %v95_v16  ;;  %341 = vmatprep.subr.mxu1 %v1093_v17  ;;  %v927_v46 = vld [vmem:[%s1146_s2 + $0x6] ss:$0 sm:$0xff]  ;;  %s1044_s2 = smov [#allocation7]  }
  0x1f   :  { %s914_s28 = sshll.u32 %s1044_s2, 4  ;;  %s915_s28 = int_to_ptr.vmem [resolvable:$true] %s914_s28 }
  0x20   :  { %v54_v11 = vrot.slane %v1075_v8, %v1071_v5  ;;  %v71_v18 = vrot.slane %v1087_v15, %v1071_v5  ;;  %v61_v21 = vrot.slane %v47_v12, %v1071_v5  ;;  %v78_v22 = vrot.slane %v64_v19, %v1071_v5  ;;  %s1013_s29 = scalar_lea.vmem %s915_s28, 256  ;;  %p1018_p11 = scmp.lt.s32.totalorder %s915_s28, %s915_s28 }
  0x21   :  { %p1014_p10 = scmp.ne.s32.totalorder %s915_s28, %s1013_s29  ;;  %p1019_p12 = scmp.lt.s32.totalorder %s1013_s29, %s1013_s29 }
  0x22   :  { %v62_v20 = vcombine.high %v54_v11, %v54_v11  ;;  %v63_v23 = vcombine.high %v61_v21, %v61_v21  ;;  %v79_v24 = vcombine.high %v71_v18, %v71_v18  ;;  %v80_v25 = vcombine.high %v78_v22, %v78_v22 }
  0x23   :  { %p1020_p13 = por %p1019_p12, %p1018_p11 }
  0x24   :  { %165 = vmatprep.mubr.f32.mxu0 %v62_v20  ;;  %235 = vmatprep.mubr.f32.mxu1 %v63_v23 }
  0x25   :  { %166 = vmatmul.mubr.f32.vlgmr.msra.gmra.mxu0 %v54_v11  ;;  %236 = vmatmul.mubr.f32.vlgmr.msra.gmra.mxu1 %v61_v21  ;;  %p1021_p0 = pnand %p1020_p13, %p1014_p10 }
  0x26   :  { %272 = vmatpush1.xpose.msra.mxu0 %v1083_v13  ;;  %342 = vmatpush1.xpose.msra.mxu1 %v1085_v14 }
  0x27   :  { %305 = vmatprep.mubr.f32.mxu0 %v79_v24  ;;  %375 = vmatprep.mubr.f32.mxu1 %v80_v25 }
  0x28   :  { %947 = vmatprep.subr.mxu0 %v1042_v26  ;;  %952 = vmatprep.subr.mxu1 %v1042_v26 }
  0x29   :  { %306 = vmatmul.mubr.f32.vlgmr.msra.gmra.mxu0 %v71_v18  ;;  %376 = vmatmul.mubr.f32.vlgmr.msra.gmra.mxu1 %v78_v22 }
  0x2a   :  { %948 = vmatpush3.msk.msra.mxu0 %vm394_vm0, %v382_v27  ;;  %949 = vmatprep.mubr.msk.f32.mxu0 %vm1043_vm1, %v1042_v26 }
  0x2b   :  { %954 = vmatprep.mubr.msk.f32.mxu1 %vm1043_vm1, %v1042_v26  ;;  %931 = vmatprep.subr.msk.mxu0 %vm394_vm0, %v93_v9 }
  0x2c   :  { %953 = vmatpush3.msk.msra.mxu1 %vm477_vm3, %v384_v40 }
  0x2d   :  { %934 = vmatprep.subr.msk.mxu1 %vm394_vm0, %v94_v10 }
  0xe5   :  { %v167_v28 = vpop.f32.mrf.mxu0  ;;  %v237_v29 = vpop.f32.mrf.mxu1 }
  0xe6   :  { %v238_v30 = vadd.f32 %v237_v29, %v167_v28 }
  0xe7   :  { %v169_v31 = vpop.f32.mrf.mxu0  ;;  %v239_v32 = vpop.f32.mrf.mxu1 }
  0xe9   :  { %v307_v33 = vpop.f32.mrf.mxu0  ;;  %v377_v35 = vpop.f32.mrf.mxu1 }
  0xea   :  { %v308_v34 = vadd.f32 %v307_v33, %v238_v30 }
  0xeb   :  { %v309_v36 = vpop.f32.mrf.mxu0  ;;  %v379_v38 = vpop.f32.mrf.mxu1 }
  0xec   :  { %v378_v37 = vadd.f32 %v377_v35, %v308_v34 }
  0xee   :  { %v381_v39 = vmul.f32 0.00390625, %v378_v37 }
  0xf0   :  { %950 = vmatmul.mubr.msk.f32.vlgmr.msra.gmra.mxu0 %vm390_vm2, %v381_v39 }
  0xf1   :  { %932 = vmatpush1.msk.msra.mxu0 %vm394_vm0, %v41_v6  ;;  %640 = vmatprep.mubr.f32.mxu0 %v1042_v26 }
  0xf2   :  { %937 = vmatprep.subr.msk.mxu0 %vm394_vm0, %v95_v16 }
 0x1b0   :  { %v464_v42 = vpop.f32.mrf.mxu0 }
 0x1b1   :  { %v465_v43 = vadd.f32 %v924_v41, %v464_v42 }
 0x1b2   :  { %v951_v44 = vpop.f32.mrf.mxu0 }
 0x1b3   :  { %v468_v45 = vmax.f32 %v465_v43, 0.0 }
 0x1b5   :  { %955 = vmatmul.mubr.msk.f32.vlgmr.msra.gmra.mxu1 %vm473_vm4, %v468_v45 }
 0x1b6   :  { %935 = vmatpush1.msk.msra.mxu1 %vm394_vm0, %v1073_v7  ;;  %711 = vmatprep.mubr.f32.mxu1 %v1042_v26 }
 0x1b7   :  { %940 = vmatprep.subr.msk.mxu1 %vm394_vm0, %v1093_v17 }
 0x275   :  { %v547_v47 = vpop.f32.mrf.mxu1 }
 0x276   :  { %v548_v48 = vadd.f32 %v927_v46, %v547_v47 }
 0x277   :  { %v956_v49 = vpop.f32.mrf.mxu1 }
 0x278   :  { %v930_v50 = vmul.f32 -1.442695, %v548_v48 }
 0x27a   :  { %969 = vpow2.f32 %v930_v50 }
 0x287   :  { %v970_v51 = vpop.eup %969 }
 0x288   :  { %v554_v52 = vadd.f32 1.0, %v970_v51 }
 0x28a   :  { %971 = vrcp.f32 %v554_v52 }
 0x297   :  { %v972_v53 = vpop.eup %971 }
 0x298   :  { %933 = vmatmul.mubr.msk.f32.vlgmr.msra.gmra.mxu0 %vm390_vm2, %v972_v53  ;;  %936 = vmatmul.mubr.msk.f32.vlgmr.msra.gmra.mxu1 %vm390_vm2, %v972_v53 }
 0x299   :  { %938 = vmatpush1.msk.msra.mxu0 %vm394_vm0, %v1083_v13  ;;  %941 = vmatpush1.msk.msra.mxu1 %vm394_vm0, %v1085_v14 }
 0x29a   :  { %782 = vmatprep.mubr.f32.mxu0 %v1042_v26  ;;  %853 = vmatprep.mubr.f32.mxu1 %v1042_v26 }
 0x29c   :  { %939 = vmatmul.mubr.msk.f32.vlgmr.msra.gmra.mxu0 %vm390_vm2, %v972_v53  ;;  %942 = vmatmul.mubr.msk.f32.vlgmr.msra.gmra.mxu1 %vm390_vm2, %v972_v53 }
 0x358   :  { %v642_v54 = vpop.f32.mrf.mxu0  ;;  %v713_v55 = vpop.f32.mrf.mxu1 }
 0x35a   :  { %v644_v56 = vpop.f32.mrf.mxu0  ;;  %v715_v57 = vpop.f32.mrf.mxu1 }
 0x35b   :  { %v868_v58 = vcombine.low %v642_v54, %v644_v56  ;;  %v869_v59 = vcombine.low %v713_v55, %v715_v57 }
 0x35c   :  { %v784_v60 = vpop.f32.mrf.mxu0  ;;  %v855_v61 = vpop.f32.mrf.mxu1 }
 0x35d   :  { %v876_v62 = vrot.slane %v868_v58, %v1071_v5  ;;  %v883_v63 = vrot.slane %v869_v59, %v1071_v5 }
 0x35e   :  { %v786_v0 = vpop.f32.mrf.mxu0  ;;  %v857_v1 = vpop.f32.mrf.mxu1 }
 0x35f   :  { %v884_v2 = vcombine.low %v876_v62, %v883_v63  ;;  %v885_v3 = vcombine.low %v784_v60, %v786_v0  ;;  %v886_v4 = vcombine.low %v855_v61, %v857_v1 }
 0x361   :  { %v893_v6 = vrot.slane %v885_v3, %v1071_v5  ;;  %v900_v7 = vrot.slane %v886_v4, %v1071_v5  ;;  %v904_v9 = vmul.f32 %v884_v2, %v1075_v8 }
 0x363   :  { %v901_v10 = vcombine.low %v893_v6, %v900_v7  ;;  %906 = vst [vmem:[#allocation7] sm:$0xff] %v904_v9 }
 0x365   :  { %v905_v11 = vmul.f32 %v901_v10, %v1087_v15 }
 0x367   :  { %907 = vst [vmem:[#allocation7 + $0x8] sm:$0xff] %v905_v11 }
 0x368   :  { %1024 = shalt.err (!%p1021_p0)
}
 0x369   :  { %917 = dma.vmem_to_hbm [thread:$0]  %s915_s28, 256, %s1147_s3, [#allocation4]  }
 0x36a   :  { %1037 = dma.done.wait [#allocation4], 256  }
 0x36b   :  { %1038 = vsyncadd [#allocation4], 4294967040 }
 0x36c   :  { %921 = vsyncpa [#allocation3], 1 }
 0x36d   :  { %922 = vsyncpa [#allocation6], 1 }
 0x36e   :  { %923 = vsyncpa [#allocation4], 1 }

</bundles_post_ra>
